<compile_context>
chip_gen: v6e
topology: v6e:2x2x1
jax: 0.10.0
libtpu: 0.0.40
codegen_flags: <defaults>
</compile_context>

<pallas_src>
import functools

import jax
import jax.numpy as jnp
from jax import lax
from jax.experimental import pallas as pl
from jax.experimental.pallas import tpu as pltpu


_MASK_VALUE = -1e30


def _round_up(n, m):
    return ((n + m - 1) // m) * m


def _vmem_limit(nbytes):
    # Explicit scoped-VMEM limit with headroom; stay within the smallest
    # physical VMEM across generations (v7x: 64 MiB per TensorCore).
    return int(min(64 * 2**20, max(16 * 2**20, 2 * nbytes + (4 << 20))))


# ---------------------------------------------------------------------------
# Kernel 1: fused (pre-scaled) QKV projection, tiled over token rows.
# ---------------------------------------------------------------------------
def _qkv_proj_kernel(x_ref, wqkv_ref, bqkv_ref, q_ref, k_ref, v_ref, *, hp):
    """x_ref: (tm, Hp) f32; wqkv_ref: (Hp, 3Hp) matmul dtype; bqkv: (1, 3Hp) f32."""
    x = x_ref[...].astype(wqkv_ref.dtype)            # bf16 cast is a no-op for f32
    qkv = jnp.dot(x, wqkv_ref[...],
                  preferred_element_type=jnp.float32) + bqkv_ref[...]
    # 128-lane-aligned static slices -> no relayout copies.
    q_ref[...] = qkv[:, 0 * hp:1 * hp].astype(q_ref.dtype)
    k_ref[...] = qkv[:, 1 * hp:2 * hp].astype(k_ref.dtype)
    v_ref[...] = qkv[:, 2 * hp:3 * hp].astype(v_ref.dtype)


# ---------------------------------------------------------------------------
# Kernel 2: flash-style attention (online softmax).
# grid = (B 'parallel', q_blocks 'parallel', kv_blocks 'arbitrary')
# ---------------------------------------------------------------------------
def _flash_attn_kernel(q_ref, k_ref, v_ref, o_ref, m_sc, l_sc, acc_sc, *,
                       seq_len, block_k, needs_mask, matmul_dtype):
    ki = pl.program_id(2)

    @pl.when(ki == 0)
    def _():
        m_sc[...] = jnp.full_like(m_sc, -jnp.inf)
        l_sc[...] = jnp.zeros_like(l_sc)
        acc_sc[...] = jnp.zeros_like(acc_sc)

    q = q_ref[...].astype(matmul_dtype)              # (bq, Hp), scale pre-folded
    k = k_ref[...].astype(matmul_dtype)              # (bk, Hp)

    # scores[i, j] = sum_h q[i, h] * k[j, h]  (contract last axes; no k^T).
    s = lax.dot_general(q, k, dimension_numbers=(((1,), (1,)), ((), ())),
                        preferred_element_type=jnp.float32)       # (bq, bk)

    if needs_mask:      # static: only emitted when the key axis is zero-padded
        col = ki * block_k + lax.broadcasted_iota(jnp.int32, s.shape, 1)
        s = jnp.where(col < seq_len, s, _MASK_VALUE)

    m_prev = m_sc[...]
    m_new = jnp.maximum(m_prev, jnp.max(s, axis=-1, keepdims=True))
    alpha = jnp.exp(m_prev - m_new)                  # EUP
    p = jnp.exp(s - m_new)                           # EUP; stays f32
    l_sc[...] = alpha * l_sc[...] + jnp.sum(p, axis=-1, keepdims=True)
    acc_sc[...] = alpha * acc_sc[...] + jnp.dot(
        p.astype(matmul_dtype), v_ref[...].astype(matmul_dtype),
        preferred_element_type=jnp.float32)
    m_sc[...] = m_new

    @pl.when(ki == pl.num_programs(2) - 1)
    def _():
        # Exact divide, once per q tile -> strict parity with F.softmax.
        o_ref[...] = (acc_sc[...] / l_sc[...]).astype(o_ref.dtype)


def self_attention(x, wq, wk, wv, bq, bk, bv, *, matmul_dtype=jnp.float32,
                   block_s=None):
    """x: (B, S, H); wq/wk/wv: (H, H) pre-transposed (in, out); b*: (H,).

    matmul_dtype: dtype of MXU operands (bf16 recommended on real shapes:
    ~2x MXU throughput, half the weight/q/k/v HBM bytes); accumulation and
    softmax math remain f32 on every chip generation."""
    B, S, H = x.shape
    in_dtype = x.dtype
    item = jnp.dtype(matmul_dtype).itemsize
    Hp = _round_up(H, 128)                            # lane-dense width

    # q/k/v intermediates are stored in matmul_dtype -> (16,128) min tile for
    # 16-bit types drives the sublane rounding.
    sub = 8 if item >= 4 else 16

    # Sequence tile: multiples of 256 feed the v6e/v7x 256x256 MXU; clamp for
    # small S.  block_s also bounds VMEM: resident set ~ O(block_s * Hp).
    if block_s is None:
        block_s = 256
    block_s = max(sub, _round_up(min(block_s, _round_up(S, sub)), sub))
    Sp = _round_up(S, block_s)
    n_s = Sp // block_s

    scale = 1.0 / (H ** 0.5)                          # matches `/ x.size(-1)**0.5`

    def pad_w(w):
        return jnp.pad(w, ((0, Hp - H), (0, Hp - H)))

    def pad_b(b):
        return jnp.pad(b, (0, Hp - H))

    # Fused QKV weight (scale folded into the query projection).
    w_qkv = jnp.concatenate([pad_w(wq * scale), pad_w(wk), pad_w(wv)],
                            axis=1).astype(matmul_dtype)           # (Hp, 3Hp)
    b_qkv = jnp.concatenate([pad_b(bq * scale), pad_b(bk), pad_b(bv)]
                            ).reshape(1, 3 * Hp).astype(jnp.float32)

    x_p = jnp.pad(x, ((0, 0), (0, Sp - S), (0, Hp - H)))           # (B, Sp, Hp)

    # ---- Kernel 1: QKV projection ----
    qkv_struct = jax.ShapeDtypeStruct((B, Sp, Hp), matmul_dtype)
    proj_bytes = 2 * (block_s * Hp * 4                 # x block (double-buffered)
                      + Hp * 3 * Hp * item             # resident weight
                      + 3 * Hp * 4                     # bias
                      + 3 * block_s * Hp * item)       # q/k/v output blocks
    q, k, v = pl.pallas_call(
        functools.partial(_qkv_proj_kernel, hp=Hp),
        out_shape=(qkv_struct, qkv_struct, qkv_struct),
        grid=(B, n_s),
        in_specs=[
            pl.BlockSpec((None, block_s, Hp), lambda b, sb: (b, sb, 0)),
            pl.BlockSpec((Hp, 3 * Hp), lambda b, sb: (0, 0)),   # resident
            pl.BlockSpec((1, 3 * Hp), lambda b, sb: (0, 0)),    # resident
        ],
        out_specs=(
            pl.BlockSpec((None, block_s, Hp), lambda b, sb: (b, sb, 0)),
            pl.BlockSpec((None, block_s, Hp), lambda b, sb: (b, sb, 0)),
            pl.BlockSpec((None, block_s, Hp), lambda b, sb: (b, sb, 0)),
        ),
        compiler_params=pltpu.CompilerParams(
            dimension_semantics=("parallel", "parallel"),
            vmem_limit_bytes=_vmem_limit(proj_bytes)),
    )(x_p, w_qkv, b_qkv)

    # ---- Kernel 2: flash attention ----
    attn_bytes = (2 * 3 * block_s * Hp * item          # q/k/v blocks (dbl-buf)
                  + 2 * block_s * Hp * 4               # output block
                  + block_s * (Hp + 2) * 4             # m/l/acc scratch
                  + 2 * block_s * block_s * 4)         # score temporaries
    out = pl.pallas_call(
        functools.partial(_flash_attn_kernel,
                          seq_len=S, block_k=block_s,
                          needs_mask=(Sp != S), matmul_dtype=matmul_dtype),
        out_shape=jax.ShapeDtypeStruct((B, Sp, Hp), in_dtype),
        grid=(B, n_s, n_s),
        in_specs=[
            pl.BlockSpec((None, block_s, Hp), lambda b, qi, ki: (b, qi, 0)),
            pl.BlockSpec((None, block_s, Hp), lambda b, qi, ki: (b, ki, 0)),
            pl.BlockSpec((None, block_s, Hp), lambda b, qi, ki: (b, ki, 0)),
        ],
        out_specs=pl.BlockSpec((None, block_s, Hp),
                               lambda b, qi, ki: (b, qi, 0)),
        scratch_shapes=[
            pltpu.VMEM((block_s, 1), jnp.float32),      # running max m
            pltpu.VMEM((block_s, 1), jnp.float32),      # running denom l
            pltpu.VMEM((block_s, Hp), jnp.float32),     # output accumulator
        ],
        compiler_params=pltpu.CompilerParams(
            dimension_semantics=("parallel", "parallel", "arbitrary"),
            vmem_limit_bytes=_vmem_limit(attn_bytes)),
    )(q, k, v)

    # Padded rows/lanes are mathematically inert (masked keys, zero lanes) and
    # are sliced off here.
    return out[:, :S, :H]


def self_attention_ref(x, wq, wk, wv, bq, bk, bv):
    """Plain-JAX reference matching the PyTorch forward."""
    q = x @ wq + bq
    k = x @ wk + bk
    v = x @ wv + bv
    scores = jnp.einsum("bqh,bkh->bqk", q, k) / (x.shape[-1] ** 0.5)
    attn = jax.nn.softmax(scores, axis=-1)
    return jnp.einsum("bqk,bkh->bqh", attn, v)


if __name__ == "__main__":
    B, S, H = 2, 8, 32  # batch, seq, hidden_dim

    key = jax.random.PRNGKey(0)
    kx, kwq, kwk, kwv, kbq, kbk, kbv = jax.random.split(key, 7)

    x = jax.random.normal(kx, (B, S, H), dtype=jnp.float32)

    # nn.Linear(hidden_dim, hidden_dim)-shaped params, stored pre-transposed
    # as (H_in, H_out) so the kernel computes x @ W + b.
    bound = 1.0 / (H ** 0.5)
    uni = lambda k_, shape: jax.random.uniform(
        k_, shape, minval=-bound, maxval=bound, dtype=jnp.float32)
    wq, wk, wv = uni(kwq, (H, H)), uni(kwk, (H, H)), uni(kwv, (H, H))
    bq, bk, bv = uni(kbq, (H,)), uni(kbk, (H,)), uni(kbv, (H,))

    ref = self_attention_ref(x, wq, wk, wv, bq, bk, bv)

    # f32 MXU operands: tight parity with the PyTorch module.
    out = jax.block_until_ready(self_attention(x, wq, wk, wv, bq, bk, bv))
    assert out.shape == (B, S, H)
    assert jnp.allclose(out, ref, atol=1e-2, rtol=1e-2), "f32 mismatch vs reference"

    # Multi-tile / masked-padding flash path: S=12 -> Sp=16, 2x2 (q, kv) tiles
    # with 4 padded keys masked in the last kv tile.
    x2 = jax.random.normal(jax.random.PRNGKey(1), (B, 12, H), dtype=jnp.float32)
    out2 = jax.block_until_ready(
        self_attention(x2, wq, wk, wv, bq, bk, bv, block_s=8))
    ref2 = self_attention_ref(x2, wq, wk, wv, bq, bk, bv)
    assert out2.shape == (B, 12, H)
    assert jnp.allclose(out2, ref2, atol=1e-2, rtol=1e-2), "tiled mismatch vs reference"

    # bf16 MXU operands (f32 accumulation, f32 softmax) — the fast path on
    # real shapes; looser tolerance accounts for bf16 rounding only.
    out3 = jax.block_until_ready(
        self_attention(x, wq, wk, wv, bq, bk, bv, matmul_dtype=jnp.bfloat16))
    assert jnp.allclose(out3, ref, atol=5e-2, rtol=5e-2), "bf16 mismatch vs reference"

    print("KERNEL_OK")
</pallas_src>

<mosaic_0001>
module attributes {stable_mosaic.version = 11 : i64} {
  func.func @_qkv_proj_kernel(%arg0: i32, %arg1: i32, %arg2: memref<1x8x128xf32, #tpu.memory_space<vmem>>, %arg3: memref<128x384xf32, #tpu.memory_space<vmem>>, %arg4: memref<1x384xf32, #tpu.memory_space<vmem>>, %arg5: memref<1x8x128xf32, #tpu.memory_space<vmem>>, %arg6: memref<1x8x128xf32, #tpu.memory_space<vmem>>, %arg7: memref<1x8x128xf32, #tpu.memory_space<vmem>>) attributes {dimension_semantics = [#tpu.dimension_semantics<parallel>, #tpu.dimension_semantics<parallel>], iteration_bounds = array<i64: 2, 1>, scalar_prefetch = 0 : i64, scratch_operands = 0 : i64, tpu.core_type = #tpu.core_type<tc>, window_params = [{transform_indices = @transform_0, window_bounds = array<i64: 1, 8, 128>}, {pipeline_mode = #tpu.pipeline_mode<synchronous>, transform_indices = @transform_1, window_bounds = array<i64: 128, 384>}, {pipeline_mode = #tpu.pipeline_mode<synchronous>, transform_indices = @transform_2, window_bounds = array<i64: 1, 384>}, {transform_indices = @transform_3, window_bounds = array<i64: 1, 8, 128>}, {transform_indices = @transform_4, window_bounds = array<i64: 1, 8, 128>}, {transform_indices = @transform_5, window_bounds = array<i64: 1, 8, 128>}]} {
    %c0 = arith.constant 0 : index
    %c0_0 = arith.constant 0 : index
    %c0_1 = arith.constant 0 : index
    %0 = vector.load %arg2[%c0, %c0_0, %c0_1] : memref<1x8x128xf32, #tpu.memory_space<vmem>>, vector<1x8x128xf32>
    %1 = vector.shape_cast %0 : vector<1x8x128xf32> to vector<8x128xf32>
    %c0_2 = arith.constant 0 : index
    %c0_3 = arith.constant 0 : index
    %2 = vector.load %arg3[%c0_2, %c0_3] : memref<128x384xf32, #tpu.memory_space<vmem>>, vector<128x384xf32>
    %cst = arith.constant dense<0.000000e+00> : vector<8x384xf32>
    %3 = tpu.matmul %1, %2, %cst {dimension_numbers = #tpu.dot_dimension_numbers<[1], [0], [0], [1], [0, 0, 1, 1], [], []>} : vector<8x128xf32>, vector<128x384xf32>, vector<8x384xf32> -> vector<8x384xf32>
    %c0_4 = arith.constant 0 : index
    %c0_5 = arith.constant 0 : index
    %4 = vector.load %arg4[%c0_4, %c0_5] : memref<1x384xf32, #tpu.memory_space<vmem>>, vector<1x384xf32>
    %5 = vector.broadcast %4 : vector<1x384xf32> to vector<8x384xf32>
    %6 = arith.addf %3, %5 : vector<8x384xf32>
    %7 = vector.extract_strided_slice %6 {offsets = [0, 0], sizes = [8, 128], strides = [1, 1]} : vector<8x384xf32> to vector<8x128xf32>
    %c0_6 = arith.constant 0 : index
    %c0_7 = arith.constant 0 : index
    %c0_8 = arith.constant 0 : index
    %8 = vector.load %arg5[%c0_6, %c0_7, %c0_8] : memref<1x8x128xf32, #tpu.memory_space<vmem>>, vector<1x8x128xf32>
    %9 = vector.shape_cast %8 : vector<1x8x128xf32> to vector<8x128xf32>
    %10 = vector.shape_cast %7 : vector<8x128xf32> to vector<1x8x128xf32>
    tpu.vector_store %arg5[%c0_6, %c0_7, %c0_8], %10 {strides = array<i32>} : memref<1x8x128xf32, #tpu.memory_space<vmem>>, vector<1x8x128xf32>,
    %11 = vector.extract_strided_slice %6 {offsets = [0, 128], sizes = [8, 128], strides = [1, 1]} : vector<8x384xf32> to vector<8x128xf32>
    %c0_9 = arith.constant 0 : index
    %c0_10 = arith.constant 0 : index
    %c0_11 = arith.constant 0 : index
    %12 = vector.load %arg6[%c0_9, %c0_10, %c0_11] : memref<1x8x128xf32, #tpu.memory_space<vmem>>, vector<1x8x128xf32>
    %13 = vector.shape_cast %12 : vector<1x8x128xf32> to vector<8x128xf32>
    %14 = vector.shape_cast %11 : vector<8x128xf32> to vector<1x8x128xf32>
    tpu.vector_store %arg6[%c0_9, %c0_10, %c0_11], %14 {strides = array<i32>} : memref<1x8x128xf32, #tpu.memory_space<vmem>>, vector<1x8x128xf32>,
    %15 = vector.extract_strided_slice %6 {offsets = [0, 256], sizes = [8, 128], strides = [1, 1]} : vector<8x384xf32> to vector<8x128xf32>
    %c0_12 = arith.constant 0 : index
    %c0_13 = arith.constant 0 : index
    %c0_14 = arith.constant 0 : index
    %16 = vector.load %arg7[%c0_12, %c0_13, %c0_14] : memref<1x8x128xf32, #tpu.memory_space<vmem>>, vector<1x8x128xf32>
    %17 = vector.shape_cast %16 : vector<1x8x128xf32> to vector<8x128xf32>
    %18 = vector.shape_cast %15 : vector<8x128xf32> to vector<1x8x128xf32>
    tpu.vector_store %arg7[%c0_12, %c0_13, %c0_14], %18 {strides = array<i32>} : memref<1x8x128xf32, #tpu.memory_space<vmem>>, vector<1x8x128xf32>,
    return
  }
  func.func @transform_0(%arg0: i32, %arg1: i32) -> (i32, i32, i32) {
    %c0_i32 = arith.constant 0 : i32
    %c0_i32_0 = arith.constant 0 : i32
    return %arg0, %arg1, %c0_i32 : i32, i32, i32
  }
  func.func @transform_1(%arg0: i32, %arg1: i32) -> (i32, i32) {
    %c0_i32 = arith.constant 0 : i32
    %c0_i32_0 = arith.constant 0 : i32
    %c0_i32_1 = arith.constant 0 : i32
    return %c0_i32, %c0_i32_0 : i32, i32
  }
  func.func @transform_2(%arg0: i32, %arg1: i32) -> (i32, i32) {
    %c0_i32 = arith.constant 0 : i32
    %c0_i32_0 = arith.constant 0 : i32
    %c0_i32_1 = arith.constant 0 : i32
    return %c0_i32, %c0_i32_0 : i32, i32
  }
  func.func @transform_3(%arg0: i32, %arg1: i32) -> (i32, i32, i32) {
    %c0_i32 = arith.constant 0 : i32
    %c0_i32_0 = arith.constant 0 : i32
    return %arg0, %arg1, %c0_i32 : i32, i32, i32
  }
  func.func @transform_4(%arg0: i32, %arg1: i32) -> (i32, i32, i32) {
    %c0_i32 = arith.constant 0 : i32
    %c0_i32_0 = arith.constant 0 : i32
    return %arg0, %arg1, %c0_i32 : i32, i32, i32
  }
  func.func @transform_5(%arg0: i32, %arg1: i32) -> (i32, i32, i32) {
    %c0_i32 = arith.constant 0 : i32
    %c0_i32_0 = arith.constant 0 : i32
    return %arg0, %arg1, %c0_i32 : i32, i32, i32
  }
}

</mosaic_0001>

<bundles_post_ra>
// kernel: tpu_custom_call.1
= control target key start
LH: loop header
LB: loop body
LE: loop exit
PB: predicated region body
PF: predicated region fallthrough
CT: control target
= control target key end

     0   :  { %s1378_s0 = inlined_call_operand.hbm [shape: f32[2,8,128], index: 0, kind: input, shape index: {}]   ;;  %s1379_s1 = inlined_call_operand.hbm [shape: f32[128,384], index: 1, kind: input, shape index: {}]   ;;  %s1380_s2 = inlined_call_operand.vmem [shape: f32[1,384], index: 2, kind: input, shape index: {}]   ;;  %s1381_s3 = inlined_call_operand.hbm [shape: f32[2,8,128], index: 3, kind: output, shape index: {0}]   ;;  %s1382_s4 = inlined_call_operand.hbm [shape: f32[2,8,128], index: 4, kind: output, shape index: {1}]   ;;  %s1383_s5 = inlined_call_operand.hbm [shape: f32[2,8,128], index: 5, kind: output, shape index: {2}]  }
   0x1   :  { %1388 = sst [smem:[#allocation16_spill]] %s1378_s0 }
   0x2   :  { %1389 = sst [smem:[#allocation17_spill]] %s1379_s1 }
   0x3   :  { %11 = vsyncpa [#allocation3], 0 }
   0x4   :  { %13 = vsyncpa [#allocation3 + $0x1], 0 }
   0x5   :  { %14 = vsyncpa [#allocation6], 0 }
   0x6   :  { %15 = vsyncpa [#allocation4], 0 }
   0x7   :  { %17 = vsyncpa [#allocation4 + $0x1], 0 }
   0x8   :  { %18 = vsyncpa [#allocation9], 0 }
   0x9   :  { %20 = vsyncpa [#allocation9 + $0x1], 0  ;;  %s1105_s18 = smov 0   ;;  %s1107_s19 = smov 0  }
   0xa   :  { %s1109_s20 = smov 0   ;;  %s1111_s21 = smov 0  }
   0xb   :  { %s1113_s22 = smov 0   ;;  %s1115_s23 = smov 0  }
   0xc LB: > { %s1136_s24 = sadd.s32 4294967295, %s1064_s23   ;;  %s1384_s25 = sadd.s32 4294967294, %s1064_s23   ;;  %s1064_s23 = sphi %s1115_s23, %s26_s23   ;;  %s1060_s22 = sphi %s1113_s22, %s1413_s22   ;;  %s1056_s21 = sphi %s1111_s21, %s1412_s21   ;;  %s1052_s20 = sphi %s1109_s20, %s1411_s20   ;;  %s1048_s19 = sphi %s1107_s19, %s1410_s19   ;;  %s1044_s18 = sphi %s1105_s18, %s1409_s18  }
   0xd   : > { %p60_p0 = scmp.ne.s32.totalorder %s1048_s19, %s1044_s18  ;;  %p1386_p1 = scmp.eq.s32.totalorder %s1136_s24, 0 }
   0xe   : > { %p134_p3 = scmp.eq.s32.totalorder %s1384_s25, 1  ;;  %p712_p5 = scmp.ge.s32.totalorder %s1064_s23, 1 }
   0xf   : > { %p1147_p4 = por %p1386_p1, %p60_p0  ;;  %p197_p7 = scmp.lt.s32.totalorder %s1064_s23, 3 }
  0x10   : > { %p1152_p6 = por %p134_p3, %p60_p0  ;;  %s1066_s29 = smov [#allocation5]  }
  0x11   : > { %p1157_p8 = pnand %p712_p5, %p197_p7  ;;  %s209_s30 = sshll.u32 %s1066_s29, 4  ;;  %s210_s30 = int_to_ptr.vmem [resolvable:$true] %s209_s30 }
  0x12   : > { %s1391_s27 = scalar_select %p1152_p6, 1, 0 }
  0x13   : > { %p795_p9 = pneg %p1157_p8  ;;  %s38_s7 = sadd.s32 1, %s1060_s22 }
  0x14   : > { %s881_s8 = scalar_lea.vmem %s210_s30, 6144  ;;  %p889_p5 = scmp.lt.s32.totalorder %s210_s30, %s210_s30 }
  0x15   : > { %p1166_p11 = pnand %p795_p9, %p1386_p1  ;;  %p882_p13 = scmp.ne.s32.totalorder %s210_s30, %s881_s8 }
  0x16   : > { %p890_p7 = scmp.lt.s32.totalorder %s881_s8, %s881_s8 }
  0x17   : > { %p872_p12 = pneg %p1166_p11 }
  0x18   : > { %p891_p2 = por %p890_p7, %p889_p5 }
  0x19   : > { %p884_p0 = pnand %p882_p13, %p872_p12 }
  0x1b   : > { %p885_p3 = pneg %p884_p0 }
  0x1d   : > { %p892_p6 = pnand %p891_p2, %p885_p3 }
  0x1f   : > { %895 = shalt.err (!%p892_p6)
}
  0x20   : > { %s1067_s9 = smov 384   ;;  %s1068_s10 = smov 24  }
  0x21   : > { %s1394_s1 = sld [smem:[#allocation17_spill]]  ;;  %p40_p2 = scmp.ge.s32.totalorder %s38_s7, 2 }
  0x22   : > { %s47_s13 = sadd.s32 1, %s1052_s20  ;;  %p54_p6 = scmp.ne.s32.totalorder %s1052_s20, %s1048_s19 }
  0x23   : > { %p55_p9 = scmp.eq.s32.totalorder %s1064_s23, 0  ;;  %s1415_s7 = smov (%p40_p2, %s38_s7), 0 }
  0x24   : > { %1395 = sst [smem:[#allocation15_spill]] %s1415_s7  ;;  %p1397_p13 = scmp.eq.s32.totalorder %s1136_s24, 1 }
  0x25   : > { %p1184_p12 = por %p55_p9, %p54_p6  ;;  %s42_s16 = ssub.s32 %s1060_s22, %s1415_s7 }
  0x26   : > { %p1190_p0 = por %p1397_p13, %p54_p6  ;;  %p814_p3 = scmp.lt.s32.totalorder %s1064_s23, 2 }
  0x27   : > { %798 = dma.hbm_to_vmem [thread:$0]  (!%p1166_p11), %s1394_s1, 6144, %s210_s30, [#allocation6], %s1067_s9, %s1067_s9, %s1068_s10  }
  0x28   : > { %p45_p11 = scmp.eq.s32.totalorder %s42_s16, 0  ;;  %s226_s17 = sand.u32 1, %s1052_s20  }
  0x29   : > { %s715_s29 = sshll.u32 %s226_s17, 3  ;;  %s716_s6 = sshll.u32 %s1060_s22, 7 }
  0x2a   : > { %s1199_s30 = scalar_select %p45_p11, %s1052_s20, %s47_s13  }
  0x2b   : > { %s1399_s0 = sld [smem:[#allocation16_spill]]  ;;  %s230_s11 = scalar_lea.vmem [#allocation2], %s715_s29 }
  0x2c   : > { %s238_s12 = sshll.u32 %s230_s11, 4  ;;  %p1207_p5 = pnand %p814_p3, %p1184_p12  ;;  %s239_s12 = int_to_ptr.vmem [resolvable:$true] %s238_s12 }
  0x2d   : > { %s227_s1 = scalar_lea.sflag [#allocation3], %s226_s17  ;;  %s909_s16 = scalar_lea.vmem %s239_s12, 128 }
  0x2e   : > { %p898_p7 = pneg %p1207_p5  ;;  %p910_p2 = scmp.ne.s32.totalorder %s239_s12, %s909_s16 }
  0x2f   : > { %s1069_s13 = smov [#allocation2]  }
  0x30   : > { %p912_p6 = pnand %p910_p2, %p898_p7  ;;  %s914_s7 = sshll.u32 %s1069_s13, 4  ;;  %s915_s7 = int_to_ptr.vmem [resolvable:$false] %s914_s7 }
  0x31   : > { %s236_s10 = scalar_lea.hbm %s1399_s0, %s716_s6  ;;  %s916_s6 = scalar_lea.vmem %s915_s7, 256 }
  0x32   : > { %p913_p9 = pneg %p912_p6  ;;  %p917_p13 = scmp.lt.s32.totalorder %s239_s12, %s915_s7 }
  0x33   : > { %p918_p11 = scmp.lt.s32.totalorder %s916_s6, %s909_s16 }
  0x35   : > { %p919_p10 = por %p918_p11, %p917_p13 }
  0x37   : > { %p920_p1 = pnand %p919_p10, %p913_p9 }
  0x39   : > { %923 = shalt.err (!%p920_p1)
}
  0x3a   : > { %802 = dma.hbm_to_vmem [thread:$0]  (!%p1207_p5), %s236_s10, 128, %s239_s12, %s227_s1  }
  0x3b   : > { %247 = sbr.rel (%p1157_p8) target bundleno = 354 (0x162), region = 32  ;;  %s1218_s14 = sand.u32 (!%p1157_p8), 1, %s1048_s19  }
  0x3c   : > { %s1221_s17 = sshll.u32 (!%p1157_p8), %s1218_s14, 3  ;;  %s250_s7 = scalar_lea.sflag (!%p1157_p8), [#allocation3], %s1218_s14 }
  0x3d   : > { %s253_s29 = scalar_lea.vmem (!%p1157_p8), [#allocation2], %s1221_s17 }
  0x40   : > { %1027 = dma.done.wait (%p1147_p4), %s250_s7, 128  }
  0x41   : > { %1029 = vsyncadd (%p1147_p4), %s250_s7, 4294967168  ;;  %p1401_p1 = scmp.eq.s32.totalorder %s1136_s24, 0 }
  0x43   : > { %1031 = dma.done.wait (%p1401_p1), [#allocation6], 6144   ;;  %p1402_p8 = pmov %p1401_p1 }
  0x44   : > { %v1070_v0 = vmov 0.0   ;;  %vm1071_vm0 = vmmov 0   ;;  %v341_v1 = vld [vmem:[#allocation5 + $0x170] sm:$0xff]  ;;  %v340_v2 = vld [vmem:[#allocation5 + $0x168] sm:$0xff]  ;;  %v338_v3 = vld [vmem:[#allocation5 + $0x158] sm:$0xff]  ;;  %v345_v50 = vlaneseq  ;;  %s726_s28 = sshll.u32 %s1056_s21, 7 }
  0x45   : > { %1033 = vsyncadd (%p1402_p8), [#allocation6], 4294961152  ;;  %748 = vmatprep.subr.mxu1 %v1070_v0  ;;  %424 = vmatprep.mubr.f32.mxu0 %v1070_v0  ;;  %v342_v4 = vld [vmem:[#allocation5 + $0x178] sm:$0xff]  ;;  %v337_v5 = vld [vmem:[#allocation5 + $0x150] sm:$0xff]  ;;  %s279_s8 = scalar_lea.vmem [#allocation7], %s1221_s17  ;;  %s293_s10 = scalar_lea.vmem [#allocation10], %s1221_s17 }
  0x46   : > { %780 = vmatprep.mubr.msk.f32.mxu1 %vm1071_vm0, %v1070_v0  ;;  %360 = vmatprep.subr.mxu0 %v341_v1  ;;  %v335_v6 = vld [vmem:[#allocation5 + $0x140] sm:$0xff]  ;;  %v334_v8 = vld [vmem:[#allocation5 + $0x138] sm:$0xff]  ;;  %v336_v9 = vld [vmem:[#allocation5 + $0x148] sm:$0xff]  ;;  %v346_v51 = vshrl.u32 %v345_v50, 7  ;;  %s529_s9 = sshll.u32 %s279_s8, 4  ;;  %s557_s11 = sshll.u32 %s293_s10, 4  ;;  %s1268_s9 = int_to_ptr.vmem [resolvable:$true] %s529_s9  ;;  %s1282_s11 = int_to_ptr.vmem [resolvable:$true] %s557_s11 }
  0x47   : > { %361 = vmatpush1.msra.mxu0 %v340_v2  ;;  %749 = vmatpush3.msra.mxu1 %v342_v4  ;;  %v339_v7 = vld [vmem:[#allocation5 + $0x160] sm:$0xff]  ;;  %v332_v10 = vld [vmem:[#allocation5 + $0x128] sm:$0xff]  ;;  %v333_v12 = vld [vmem:[#allocation5 + $0x130] sm:$0xff]  ;;  %s1387_s12 = scalar_lea.vmem [#allocation8], %s1221_s17  ;;  %s1266_s7 = scalar_lea.hbm %s1381_s3, %s726_s28 }
  0x48   : > { %362 = vmatprep.subr.mxu0 %v338_v3  ;;  %750 = vmatprep.subr.mxu1 %v1070_v0  ;;  %v331_v11 = vld [vmem:[#allocation5 + $0x120] sm:$0xff]  ;;  %v329_v13 = vld [vmem:[#allocation5 + $0x110] sm:$0xff]  ;;  %v328_v14 = vld [vmem:[#allocation5 + $0x108] sm:$0xff]  ;;  %v347_v52 = vsub.s32 0, %v346_v51  ;;  %v355_v53 = vsub.s32 2, %v346_v51  ;;  %v351_v55 = vsub.s32 1, %v346_v51  ;;  %s1273_s1 = scalar_lea.hbm %s1382_s4, %s726_s28  ;;  %s1280_s6 = scalar_lea.hbm %s1383_s5, %s726_s28 }
  0x49   : > { %363 = vmatpush1.msra.mxu0 %v337_v5  ;;  %751 = vmatpush3.msra.mxu1 %v339_v7  ;;  %v330_v15 = vld [vmem:[#allocation5 + $0x118] sm:$0xff]  ;;  %v325_v17 = vld [vmem:[#allocation5 + $0xf0] sm:$0xff]  ;;  %v327_v18 = vld [vmem:[#allocation5 + $0x100] sm:$0xff]  ;;  %s543_s16 = sshll.u32 %s1387_s12, 4  ;;  %s505_s26 = scalar_lea.sflag [#allocation4], %s1218_s14  ;;  %s1275_s16 = int_to_ptr.vmem [resolvable:$true] %s543_s16 }
  0x4a   : > { %364 = vmatprep.subr.mxu0 %v335_v6  ;;  %752 = vmatprep.subr.mxu1 %v1070_v0  ;;  %v326_v16 = vld [vmem:[#allocation5 + $0xf8] sm:$0xff]  ;;  %v323_v19 = vld [vmem:[#allocation5 + $0xe0] sm:$0xff]  ;;  %v324_v21 = vld [vmem:[#allocation5 + $0xe8] sm:$0xff]  ;;  %s924_s12 = scalar_lea.vmem %s1268_s9, 128  ;;  %s1072_s21 = smov [#allocation7]  }
  0x4b   : > { %365 = vmatpush1.msra.mxu0 %v334_v8  ;;  %753 = vmatpush3.msra.mxu1 %v336_v9  ;;  %v322_v20 = vld [vmem:[#allocation5 + $0xd8] sm:$0xff]  ;;  %v320_v22 = vld [vmem:[#allocation5 + $0xc8] sm:$0xff]  ;;  %v319_v23 = vld [vmem:[#allocation5 + $0xc0] sm:$0xff]  ;;  %p925_p4 = scmp.ne.s32.totalorder %s1268_s9, %s924_s12 }
  0x4c   : > { %366 = vmatprep.subr.mxu0 %v332_v10  ;;  %754 = vmatprep.subr.mxu1 %v1070_v0  ;;  %v321_v24 = vld [vmem:[#allocation5 + $0xd0] sm:$0xff]  ;;  %v316_v26 = vld [vmem:[#allocation5 + $0xa8] sm:$0xff]  ;;  %v318_v27 = vld [vmem:[#allocation5 + $0xb8] sm:$0xff] }
  0x4d   : > { %367 = vmatpush1.msra.mxu0 %v331_v11  ;;  %755 = vmatpush3.msra.mxu1 %v333_v12  ;;  %v317_v25 = vld [vmem:[#allocation5 + $0xb0] sm:$0xff]  ;;  %v314_v28 = vld [vmem:[#allocation5 + $0x98] sm:$0xff]  ;;  %v315_v30 = vld [vmem:[#allocation5 + $0xa0] sm:$0xff]  ;;  %p926_p10 = pnand %p925_p4, %p1190_p0 }
  0x4e   : > { %368 = vmatprep.subr.mxu0 %v329_v13  ;;  %756 = vmatprep.subr.mxu1 %v1070_v0  ;;  %v313_v29 = vld [vmem:[#allocation5 + $0x90] sm:$0xff]  ;;  %v311_v31 = vld [vmem:[#allocation5 + $0x80] sm:$0xff]  ;;  %v310_v32 = vld [vmem:[#allocation5 + $0x78] sm:$0xff] }
  0x4f   : > { %369 = vmatpush1.msra.mxu0 %v328_v14  ;;  %757 = vmatpush3.msra.mxu1 %v330_v15  ;;  %v312_v33 = vld [vmem:[#allocation5 + $0x88] sm:$0xff]  ;;  %v307_v35 = vld [vmem:[#allocation5 + $0x60] sm:$0xff]  ;;  %v309_v36 = vld [vmem:[#allocation5 + $0x70] sm:$0xff]  ;;  %p927_p12 = pneg %p926_p10 }
  0x50   : > { %370 = vmatprep.subr.mxu0 %v326_v16  ;;  %758 = vmatprep.subr.mxu1 %v1070_v0  ;;  %v308_v34 = vld [vmem:[#allocation5 + $0x68] sm:$0xff]  ;;  %v305_v37 = vld [vmem:[#allocation5 + $0x50] sm:$0xff]  ;;  %v306_v39 = vld [vmem:[#allocation5 + $0x58] sm:$0xff] }
  0x51   : > { %371 = vmatpush1.msra.mxu0 %v325_v17  ;;  %759 = vmatpush3.msra.mxu1 %v327_v18  ;;  %v304_v38 = vld [vmem:[#allocation5 + $0x48] sm:$0xff]  ;;  %v302_v40 = vld [vmem:[#allocation5 + $0x38] sm:$0xff]  ;;  %v301_v41 = vld [vmem:[#allocation5 + $0x30] sm:$0xff] }
  0x52   : > { %372 = vmatprep.subr.mxu0 %v323_v19  ;;  %760 = vmatprep.subr.mxu1 %v1070_v0  ;;  %v303_v42 = vld [vmem:[#allocation5 + $0x40] sm:$0xff]  ;;  %v298_v44 = vld [vmem:[#allocation5 + $0x18] sm:$0xff]  ;;  %v300_v45 = vld [vmem:[#allocation5 + $0x28] sm:$0xff] }
  0x53   : > { %373 = vmatpush1.msra.mxu0 %v322_v20  ;;  %761 = vmatpush3.msra.mxu1 %v324_v21  ;;  %v299_v43 = vld [vmem:[#allocation5 + $0x20] sm:$0xff]  ;;  %v296_v46 = vld [vmem:[#allocation5 + $0x8] sm:$0xff]  ;;  %v297_v48 = vld [vmem:[#allocation5 + $0x10] sm:$0xff] }
  0x54   : > { %374 = vmatprep.subr.mxu0 %v320_v22  ;;  %762 = vmatprep.subr.mxu1 %v1070_v0  ;;  %v295_v47 = vld [vmem:[#allocation5] sm:$0xff]  ;;  %v294_v49 = vld [vmem:[%s253_s29] sm:$0xff]  ;;  %s928_s29 = sshll.u32 %s1072_s21, 4  ;;  %s929_s29 = int_to_ptr.vmem [resolvable:$false] %s928_s29 }
  0x55   : > { %375 = vmatpush1.msra.mxu0 %v319_v23  ;;  %763 = vmatpush3.msra.mxu1 %v321_v24  ;;  %v343_v54 = vld [vmem:[%s1380_s2] sm:$0x7]  ;;  %s930_s0 = scalar_lea.vmem %s929_s29, 256  ;;  %p931_p3 = scmp.lt.s32.totalorder %s1268_s9, %s929_s29 }
  0x56   : > { %376 = vmatprep.subr.mxu0 %v317_v25  ;;  %764 = vmatprep.subr.mxu1 %v1070_v0  ;;  %v348_v56 = vrot.slane %v343_v54, %v347_v52  ;;  %v356_v57 = vrot.slane %v343_v54, %v355_v53  ;;  %v352_v58 = vrot.slane %v343_v54, %v351_v55  ;;  %p932_p5 = scmp.lt.s32.totalorder %s930_s0, %s924_s12 }
  0x57   : > { %377 = vmatpush1.msra.mxu0 %v316_v26  ;;  %765 = vmatpush3.msra.mxu1 %v318_v27 }
  0x58   : > { %378 = vmatprep.subr.mxu0 %v314_v28  ;;  %766 = vmatprep.subr.mxu1 %v1070_v0  ;;  %p933_p7 = por %p932_p5, %p931_p3 }
  0x59   : > { %379 = vmatpush1.msra.mxu0 %v313_v29  ;;  %767 = vmatpush3.msra.mxu1 %v315_v30 }
  0x5a   : > { %380 = vmatprep.subr.mxu0 %v311_v31  ;;  %768 = vmatprep.subr.mxu1 %v1070_v0  ;;  %p934_p2 = pnand %p933_p7, %p927_p12 }
  0x5b   : > { %381 = vmatpush1.msra.mxu0 %v310_v32  ;;  %769 = vmatpush3.msra.mxu1 %v312_v33 }
  0x5c   : > { %382 = vmatprep.subr.mxu0 %v308_v34  ;;  %770 = vmatprep.subr.mxu1 %v1070_v0 }
  0x5d   : > { %383 = vmatpush1.msra.mxu0 %v307_v35  ;;  %771 = vmatpush3.msra.mxu1 %v309_v36 }
  0x5e   : > { %384 = vmatprep.subr.mxu0 %v305_v37  ;;  %772 = vmatprep.subr.mxu1 %v1070_v0 }
  0x5f   : > { %385 = vmatpush1.msra.mxu0 %v304_v38  ;;  %773 = vmatpush3.msra.mxu1 %v306_v39 }
  0x60   : > { %386 = vmatprep.subr.mxu0 %v302_v40  ;;  %774 = vmatprep.subr.mxu1 %v1070_v0 }
  0x61   : > { %387 = vmatpush1.msra.mxu0 %v301_v41  ;;  %775 = vmatpush3.msra.mxu1 %v303_v42 }
  0x62   : > { %388 = vmatprep.subr.mxu0 %v299_v43  ;;  %776 = vmatprep.subr.mxu1 %v1070_v0 }
  0x63   : > { %389 = vmatpush1.msra.mxu0 %v298_v44  ;;  %777 = vmatpush3.msra.mxu1 %v300_v45 }
  0x64   : > { %390 = vmatprep.subr.mxu0 %v296_v46  ;;  %778 = vmatprep.subr.mxu1 %v1070_v0 }
  0x65   : > { %391 = vmatpush1.msra.mxu0 %v295_v47  ;;  %779 = vmatpush3.msra.mxu1 %v297_v48 }
  0x66   : > { %425 = vmatmul.mubr.f32.vlgmr.msra.gmra.mxu0 %v294_v49  ;;  %781 = vmatmul.mubr.f32.vlgmr.msra.gmra.mxu1 %v294_v49 }
 0x126   : > { %v426_v59 = vpop.f32.mrf.mxu0  ;;  %v497_v60 = vpop.f32.mrf.mxu1 }
 0x127   : > { %v427_v61 = vadd.f32 %v426_v59, %v348_v56  ;;  %v498_v62 = vadd.f32 %v497_v60, %v356_v57 }
 0x128   : > { %v428_v63 = vpop.f32.mrf.mxu0  ;;  %v782_v0 = vpop.f32.mrf.mxu1 }
 0x129   : > { %501 = vst [vmem:[%s279_s8] sm:$0xff] %v427_v61  ;;  %503 = vst [vmem:[%s293_s10] sm:$0xff] %v498_v62  ;;  %v429_v1 = vadd.f32 %v428_v63, %v352_v58 }
 0x12a   : > { %937 = shalt.err (!%p934_p2)
}
 0x12b   : > { %s938_s28 = scalar_lea.hbm %s1266_s7, 128  ;;  %s942_s10 = scalar_lea.hbm %s1381_s3, 256 }
 0x12c   : > { %p939_p6 = scmp.ne.s32.totalorder %s1266_s7, %s938_s28  ;;  %p943_p11 = scmp.lt.s32.totalorder %s1266_s7, %s1381_s3 }
 0x12d   : > { %p944_p1 = scmp.lt.s32.totalorder %s942_s10, %s938_s28 }
 0x12e   : > { %p940_p9 = pnand %p939_p6, %p1190_p0 }
 0x12f   : > { %p945_p8 = por %p944_p1, %p943_p11 }
 0x130   : > { %p941_p13 = pneg %p940_p9 }
 0x132   : > { %p946_p4 = pnand %p945_p8, %p941_p13 }
 0x134   : > { %949 = shalt.err (!%p946_p4)
}
 0x135   : > { %789 = dma.vmem_to_hbm [thread:$0]  (%p1190_p0), %s1268_s9, 128, %s1266_s7, %s505_s26  }
 0x136   : > { %s1403_s0 = scalar_lea.vmem [#allocation8], %s1221_s17  ;;  %s1404_s12 = sand.u32 1, %s1136_s24  }
 0x137   : > { %502 = vst [vmem:[%s1403_s0] sm:$0xff] %v429_v1  ;;  %s1309_s21 = scalar_lea.sflag [#allocation9], %s1404_s12  ;;  %s950_s29 = scalar_lea.vmem %s1275_s16, 128 }
 0x138   : > { %p951_p10 = scmp.ne.s32.totalorder %s1275_s16, %s950_s29  ;;  %s1073_s28 = smov [#allocation8]  }
 0x139   : > { %s954_s14 = sshll.u32 %s1073_s28, 4  ;;  %s955_s14 = int_to_ptr.vmem [resolvable:$false] %s954_s14 }
 0x13a   : > { %p952_p12 = pnand %p951_p10, %p1190_p0  ;;  %s956_s8 = scalar_lea.vmem %s955_s14, 256 }
 0x13b   : > { %p957_p5 = scmp.lt.s32.totalorder %s1275_s16, %s955_s14  ;;  %p958_p7 = scmp.lt.s32.totalorder %s956_s8, %s950_s29 }
 0x13c   : > { %p953_p3 = pneg %p952_p12 }
 0x13d   : > { %p959_p2 = por %p958_p7, %p957_p5 }
 0x13f   : > { %p960_p6 = pnand %p959_p2, %p953_p3 }
 0x141   : > { %963 = shalt.err (!%p960_p6)
}
 0x142   : > { %s964_s24 = scalar_lea.hbm %s1273_s1, 128  ;;  %s968_s9 = scalar_lea.hbm %s1382_s4, 256 }
 0x143   : > { %p965_p9 = scmp.ne.s32.totalorder %s1273_s1, %s964_s24  ;;  %p969_p1 = scmp.lt.s32.totalorder %s1273_s1, %s1382_s4 }
 0x144   : > { %p970_p8 = scmp.lt.s32.totalorder %s968_s9, %s964_s24 }
 0x145   : > { %p966_p13 = pnand %p965_p9, %p1190_p0 }
 0x146   : > { %p971_p4 = por %p970_p8, %p969_p1 }
 0x147   : > { %p967_p11 = pneg %p966_p13 }
 0x149   : > { %p972_p10 = pnand %p971_p4, %p967_p11 }
 0x14b   : > { %975 = shalt.err (!%p972_p10)
}
 0x14c   : > { %790 = dma.vmem_to_hbm [thread:$0]  (%p1190_p0), %s1275_s16, 128, %s1273_s1, %s1309_s21  }
 0x14d   : > { %s976_s25 = scalar_lea.vmem %s1282_s11, 128  ;;  %s1074_s13 = smov [#allocation10]  }
 0x14e   : > { %p977_p12 = scmp.ne.s32.totalorder %s1282_s11, %s976_s25  ;;  %s980_s0 = sshll.u32 %s1074_s13, 4  ;;  %s981_s0 = int_to_ptr.vmem [resolvable:$false] %s980_s0 }
 0x14f   : > { %s982_s12 = scalar_lea.vmem %s981_s0, 256  ;;  %p983_p7 = scmp.lt.s32.totalorder %s1282_s11, %s981_s0 }
 0x150   : > { %p978_p3 = pnand %p977_p12, %p1190_p0  ;;  %p984_p2 = scmp.lt.s32.totalorder %s982_s12, %s976_s25 }
 0x152   : > { %p979_p5 = pneg %p978_p3  ;;  %p985_p6 = por %p984_p2, %p983_p7 }
 0x154   : > { %p986_p9 = pnand %p985_p6, %p979_p5 }
 0x156   : > { %989 = shalt.err (!%p986_p9)
}
 0x157   : > { %s990_s29 = scalar_lea.hbm %s1280_s6, 128  ;;  %s994_s28 = scalar_lea.hbm %s1383_s5, 256 }
 0x158   : > { %p991_p13 = scmp.ne.s32.totalorder %s1280_s6, %s990_s29  ;;  %p995_p8 = scmp.lt.s32.totalorder %s1280_s6, %s1383_s5 }
 0x159   : > { %p996_p4 = scmp.lt.s32.totalorder %s994_s28, %s990_s29 }
 0x15a   : > { %p992_p11 = pnand %p991_p13, %p1190_p0 }
 0x15b   : > { %p997_p10 = por %p996_p4, %p995_p8 }
 0x15c   : > { %p993_p1 = pneg %p992_p11 }
 0x15e   : > { %p998_p12 = pnand %p997_p10, %p993_p1 }
 0x160   : > { %1001 = shalt.err (!%p998_p12)
}
 0x161   : > { %791 = dma.vmem_to_hbm [thread:$0]  (%p1190_p0), %s1282_s11, 128, %s1280_s6, %s1309_s21  }
 0x162 PF: > { %s569_s24 = sand.u32 1, %s1044_s18   ;;  %p1405_p3 = scmp.ne.s32.totalorder %s1391_s27, 0 }
 0x163   : > { %p1406_p5 = scmp.ge.s32.totalorder %s1064_s23, 2  ;;  %s570_s17 = scalar_lea.sflag [#allocation4], %s569_s24 }
 0x165   : > { %p804_p7 = pnand %p1406_p5, %p1405_p3 }
 0x167   : > { %p805_p2 = pneg %p804_p7 }
 0x169   : > { %1035 = dma.done.wait (%p805_p2), %s570_s17, 128  }
 0x16a   : > { %1037 = vsyncadd (%p805_p2), %s570_s17, 4294967168  ;;  %s1407_s26 = sadd.s32 4294967294, %s1064_s23  }
 0x16b   : > { %s578_s9 = sand.u32 1, %s1407_s26  }
 0x16c   : > { %s579_s15 = scalar_lea.sflag [#allocation9], %s578_s9 }
 0x16d   : > { %1039 = dma.done.wait (%p805_p2), %s579_s15, 256  }
 0x16e   : > { %1041 = vsyncadd (%p805_p2), %s579_s15, 4294967040  ;;  %s26_s23 = sadd.s32 1, %s1064_s23   ;;  %s1408_s27 = sld [smem:[#allocation15_spill]] }
 0x16f   : > { %p23_p0 = scmp.ge.s32.totalorder %s26_s23, 4   ;;  %s1409_s18 = smov %s1048_s19 }
 0x170   : > { %s1410_s19 = smov %s1052_s20  ;;  %s1411_s20 = smov %s1199_s30 }
 0x171   : > { %s1412_s21 = smov %s1060_s22  ;;  %25 = sbr.rel (!%p23_p0) target bundleno = 12 (0xc), region = 113 }
 0x174   : > { %s1413_s22 = smov %s1408_s27 }
 0x176   :  { %593 = vsyncpa [#allocation3], 1 }
 0x177   :  { %595 = vsyncpa [#allocation3 + $0x1], 1 }
 0x178   :  { %596 = vsyncpa [#allocation6], 1 }
 0x179   :  { %597 = vsyncpa [#allocation4], 1 }
 0x17a   :  { %599 = vsyncpa [#allocation4 + $0x1], 1 }
 0x17b   :  { %600 = vsyncpa [#allocation9], 1 }
 0x17c   :  { %602 = vsyncpa [#allocation9 + $0x1], 1 }

</bundles_post_ra>
